<compile_context>
chip_gen: v5e
topology: v5e:2x2
jax: 0.10.0
libtpu: 0.0.40
codegen_flags: <defaults>
</compile_context>

<pallas_src>
import math
from functools import partial

import jax
import jax.numpy as jnp
from jax.experimental import pallas as pl
from jax.experimental.pallas import tpu as pltpu


def _round_up(x, m):
    return ((x + m - 1) // m) * m


def _row_tiling(n, max_tile):
    """Balanced row tiling: near-equal tiles (multiple of 8 sublanes) and an
    even number of grid steps when >1 step so the 'parallel' axis can shard
    across both v7x TensorCores."""
    steps = max(1, -(-n // max_tile))
    if steps > 1 and steps % 2:
        steps += 1
    tile = _round_up(-(-n // steps), 8)
    return tile, tile * steps, steps


_VMEM_LIMIT = 32 * 1024 * 1024   # explicit scoped-VMEM budget; safe on v5e/v6e/v7x


# ----------------------------------------------------------------------------
# One-time parameter preprocessing (hoisted out of the per-call path)
# ----------------------------------------------------------------------------
def _prep_sfu(w_r, b_r, w_g, b_g):
    """Fuse [Wr | Wg] column-wise, pad each half to a 128-lane multiple, bf16."""
    kdim, din = w_r.shape
    hp = _round_up(din, 128)

    def pad_cols(w):
        return jnp.pad(w.astype(jnp.float32), ((0, 0), (0, hp - din)))

    w = jnp.concatenate([pad_cols(w_r), pad_cols(w_g)], axis=1).astype(jnp.bfloat16)
    b = jnp.concatenate([
        jnp.pad(b_r.astype(jnp.float32), (0, hp - din)),
        jnp.pad(b_g.astype(jnp.float32), (0, hp - din)),
    ]).reshape(1, 2 * hp)
    return {"w": w, "b": b}            # w: (din+df, 2*Hp) bf16, b: (1, 2*Hp) f32


def _prep_fn(wh, bh, wo, bo):
    """Pad the FN hidden dim to a 128-lane multiple; Wh in bf16, rest f32."""
    in_dim, hd = wh.shape
    hh = _round_up(hd, 128)
    wh_p = jnp.pad(wh.astype(jnp.float32), ((0, 0), (0, hh - hd))).astype(jnp.bfloat16)
    bh_p = jnp.pad(bh.astype(jnp.float32), (0, hh - hd)).reshape(1, hh)
    wo_p = jnp.pad(wo.astype(jnp.float32), (0, hh - hd)).reshape(1, hh)
    bo_p = jnp.asarray(bo, jnp.float32).reshape(1, 1)
    return {"wh": wh_p, "bh": bh_p, "wo": wo_p, "bo": bo_p}


def prepare_pointer_params(p):
    """Run once; reuse for every pointer_forward call."""
    return {
        "start": _prep_fn(p["start_wh"], p["start_bh"], p["start_wo"], p["start_bo"]),
        "end":   _prep_fn(p["end_wh"], p["end_bh"], p["end_wo"], p["end_bo"]),
        "sfu1":  _prep_sfu(p["sfu1_wr"], p["sfu1_br"], p["sfu1_wg"], p["sfu1_bg"]),
        "sfu2":  _prep_sfu(p["sfu2_wr"], p["sfu2_br"], p["sfu2_wg"], p["sfu2_bg"]),
    }


# ----------------------------------------------------------------------------
# SFU kernel:  o = g * (r - x) + x   (== g*r + (1-g)*x)
#   y = [x | f] @ [Wr | Wg] + [br | bg]     (single bf16 matmul, f32 accumulate)
#   r = tanh(y[:, :Hp]),  g = sigmoid(y[:, Hp:]) computed as 0.5*tanh(0.5*y)+0.5
# ----------------------------------------------------------------------------
def _sfu_kernel(x_ref, f_ref, w_ref, b_ref, o_ref, *, din, hp):
    x = x_ref[...]                                                     # (T, din) f32 residual
    m = jnp.concatenate([x.astype(jnp.bfloat16), f_ref[...]], axis=-1)  # (T, K) built in VMEM
    y = jnp.dot(m, w_ref[...], preferred_element_type=jnp.float32) + b_ref[...]
    r = jnp.tanh(y[:, :hp])
    g = 0.5 * jnp.tanh(0.5 * y[:, hp:]) + 0.5        # sigmoid via tanh: one EUP push
    if hp == din:
        xp = x
    else:                                            # pad residual in VMEM (never in HBM)
        xp = jnp.concatenate(
            [x, jnp.zeros((x.shape[0], hp - din), jnp.float32)], axis=-1)
    o_ref[...] = (g * (r - xp) + xp).astype(o_ref.dtype)


def sfu_forward(inputs, fusions, prep, *, max_tile_rows=512):
    """inputs: (..., Din), fusions: (..., Df) -> (..., Din)."""
    lead = inputs.shape[:-1]
    din = inputs.shape[-1]
    df = fusions.shape[-1]
    w, b = prep["w"], prep["b"]
    kdim, two_hp = w.shape
    hp = two_hp // 2
    assert kdim == din + df

    n = math.prod(lead) if lead else 1
    x = inputs.reshape(n, din).astype(jnp.float32)    # residual stays f32
    f = fusions.reshape(n, df).astype(jnp.bfloat16)   # matmul-only operand -> bf16

    tile, n_pad, steps = _row_tiling(n, max_tile_rows)
    if n_pad != n:
        x = jnp.pad(x, ((0, n_pad - n), (0, 0)))
        f = jnp.pad(f, ((0, n_pad - n), (0, 0)))

    out = pl.pallas_call(
        partial(_sfu_kernel, din=din, hp=hp),
        out_shape=jax.ShapeDtypeStruct((n_pad, hp), jnp.float32),
        grid_spec=pltpu.PrefetchScalarGridSpec(
            num_scalar_prefetch=0,
            grid=(steps,),
            in_specs=[
                pl.BlockSpec((tile, din), lambda i: (i, 0)),      # x rows (true width)
                pl.BlockSpec((tile, df), lambda i: (i, 0)),       # fusion rows
                pl.BlockSpec((kdim, two_hp), lambda i: (0, 0)),   # fused [Wr|Wg]
                pl.BlockSpec((1, two_hp), lambda i: (0, 0)),      # fused bias
            ],
            out_specs=pl.BlockSpec((tile, hp), lambda i: (i, 0)),  # lane-dense store
        ),
        compiler_params=pltpu.CompilerParams(
            dimension_semantics=("parallel",),
            vmem_limit_bytes=_VMEM_LIMIT,
        ),
    )(x, f, w, b)

    out = out[:n, :din].reshape(lead + (din,))
    return out.astype(inputs.dtype)


# ----------------------------------------------------------------------------
# FN kernel: logit = relu([h | zs | h*zs] @ Wh + bh) . wo + bo   (per (b, c) row)
# The 3D-wide operand is built in VMEM from separate h / zs refs.
# ----------------------------------------------------------------------------
def _fn_logits_kernel(h_ref, z_ref, wh_ref, bh_ref, wo_ref, bo_ref, o_ref):
    h = h_ref[0]                                           # (T, D) bf16
    zb = jnp.broadcast_to(z_ref[0], h.shape)               # (T, D) bf16
    m = jnp.concatenate([h, zb, h * zb], axis=-1)          # (T, 3D) built in VMEM
    hdd = jnp.dot(m, wh_ref[...], preferred_element_type=jnp.float32) + bh_ref[...]
    hdd = jax.nn.relu(hdd)                                 # (T, Hh) f32
    logit = jnp.sum(hdd * wo_ref[...], axis=-1, keepdims=True) + bo_ref[...]
    o_ref[0] = logit.astype(o_ref.dtype)                   # (T, 1)


def fn_forward(h_bt, zs, x_mask, prep, *, max_tile_rows=512):
    """
    h_bt: (B, c_len, D) bf16 (batch-major h), zs: (B, D), x_mask: (B, c_len)
    returns: (B, c_len) masked softmax over c_len
    """
    batch, c_len, d = h_bt.shape
    wh, bh, wo, bo = prep["wh"], prep["bh"], prep["wo"], prep["bo"]
    in_dim, hh = wh.shape
    assert in_dim == 3 * d

    tile, c_pad, steps = _row_tiling(c_len, max_tile_rows)
    if c_pad != c_len:
        h_bt = jnp.pad(h_bt, ((0, 0), (0, c_pad - c_len), (0, 0)))
    zs3 = zs.astype(jnp.bfloat16).reshape(batch, 1, d)

    logits = pl.pallas_call(
        _fn_logits_kernel,
        out_shape=jax.ShapeDtypeStruct((batch, c_pad, 1), jnp.float32),
        grid_spec=pltpu.PrefetchScalarGridSpec(
            num_scalar_prefetch=0,
            grid=(batch, steps),
            in_specs=[
                pl.BlockSpec((1, tile, d), lambda b, c: (b, c, 0)),   # h row tile
                pl.BlockSpec((1, 1, d), lambda b, c: (b, 0, 0)),      # zs row for this batch
                pl.BlockSpec((in_dim, hh), lambda b, c: (0, 0)),      # Wh (3 row blocks)
                pl.BlockSpec((1, hh), lambda b, c: (0, 0)),           # bh
                pl.BlockSpec((1, hh), lambda b, c: (0, 0)),           # wo
                pl.BlockSpec((1, 1), lambda b, c: (0, 0)),            # bo
            ],
            out_specs=pl.BlockSpec((1, tile, 1), lambda b, c: (b, c, 0)),
        ),
        compiler_params=pltpu.CompilerParams(
            dimension_semantics=("parallel", "parallel"),
            vmem_limit_bytes=_VMEM_LIMIT,
        ),
    )(h_bt, zs3, wh, bh, wo, bo)

    logits = logits[:, :c_len, 0]                          # (B, c_len)
    # TODO(synk): masked softmax kept in plain JAX (tiny (B, c_len) tensor).
    logits = jnp.where(x_mask == 0, -jnp.inf, logits)
    return jax.nn.softmax(logits, axis=1)


# ----------------------------------------------------------------------------
# Pointer forward (orchestrates the Pallas kernels)
# ----------------------------------------------------------------------------
def pointer_forward(h, h_mask, zs, prep):
    # eval mode: dropout == identity
    # Single batch-major bf16 copy of h shared by both FN kernels; the
    # (c_len, B, 3D) concat is never materialized in HBM.
    h_bt = jnp.transpose(h, (1, 0, 2)).astype(jnp.bfloat16)    # (B, c_len, D)

    start_p = fn_forward(h_bt, zs, h_mask, prep["start"])
    us = jnp.einsum("bc,cbd->bd", start_p, h)                  # tiny bmm, plain JAX
    ze = sfu_forward(zs, us, prep["sfu1"])

    end_p = fn_forward(h_bt, ze, h_mask, prep["end"])
    ue = jnp.einsum("bc,cbd->bd", end_p, h)
    zs_new = sfu_forward(ze, ue, prep["sfu2"])

    o = jnp.stack([start_p, end_p])                            # (2, B, c_len)
    return o, zs_new


# ----------------------------------------------------------------------------
# Pure-JAX reference (mirrors the PyTorch module, eval mode, f32)
# ----------------------------------------------------------------------------
def pointer_reference(h, h_mask, zs, p):
    def fn_ref(x, mask, wh, bh, wo, bo):
        hdd = jax.nn.relu(x @ wh + bh)
        logit = (hdd @ wo + bo).T                              # (B, c_len)
        logit = jnp.where(mask == 0, -jnp.inf, logit)
        return jax.nn.softmax(logit, axis=1)

    def sfu_ref(inputs, fusions, wr, br, wg, bg):
        m = jnp.concatenate([inputs, fusions], axis=-1)
        r = jnp.tanh(m @ wr + br)
        g = jax.nn.sigmoid(m @ wg + bg)
        return g * r + (1.0 - g) * inputs

    c_len, batch, d = h.shape
    zs_b = jnp.broadcast_to(zs[None], (c_len, batch, d))
    x = jnp.concatenate([h, zs_b, h * zs_b], -1)
    start_p = fn_ref(x, h_mask, p["start_wh"], p["start_bh"],
                     p["start_wo"], p["start_bo"])
    us = jnp.einsum("bc,cbd->bd", start_p, h)
    ze = sfu_ref(zs, us, p["sfu1_wr"], p["sfu1_br"], p["sfu1_wg"], p["sfu1_bg"])
    ze_b = jnp.broadcast_to(ze[None], (c_len, batch, d))
    x2 = jnp.concatenate([h, ze_b, h * ze_b], -1)
    end_p = fn_ref(x2, h_mask, p["end_wh"], p["end_bh"],
                   p["end_wo"], p["end_bo"])
    ue = jnp.einsum("bc,cbd->bd", end_p, h)
    zs_new = sfu_ref(ze, ue, p["sfu2_wr"], p["sfu2_br"], p["sfu2_wg"], p["sfu2_bg"])
    return jnp.stack([start_p, end_p]), zs_new


if __name__ == "__main__":
    c_len, batch, D, hidden = 8, 2, 32, 32      # input_size=32, hidden_size=32
    key = jax.random.PRNGKey(0)
    ks = jax.random.split(key, 20)

    h = jax.random.normal(ks[0], (c_len, batch, D), dtype=jnp.float32)
    zs = jax.random.normal(ks[1], (batch, D), dtype=jnp.float32)
    # mask: batch 1 has its last two positions masked out
    h_mask = jnp.ones((batch, c_len), jnp.int32).at[1, c_len - 2:].set(0)

    def linear(kw, kb, fan_in, fan_out):
        bound = 1.0 / math.sqrt(fan_in)
        w = jax.random.uniform(kw, (fan_in, fan_out), minval=-bound,
                               maxval=bound, dtype=jnp.float32)
        b = jax.random.uniform(kb, (fan_out,), minval=-bound,
                               maxval=bound, dtype=jnp.float32)
        return w, b

    start_wh, start_bh = linear(ks[2], ks[3], 3 * D, hidden)
    start_wo_m, start_bo_v = linear(ks[4], ks[5], hidden, 1)
    end_wh, end_bh = linear(ks[6], ks[7], 3 * D, hidden)
    end_wo_m, end_bo_v = linear(ks[8], ks[9], hidden, 1)
    sfu1_wr, sfu1_br = linear(ks[10], ks[11], 2 * D, D)
    sfu1_wg, sfu1_bg = linear(ks[12], ks[13], 2 * D, D)
    sfu2_wr, sfu2_br = linear(ks[14], ks[15], 2 * D, D)
    sfu2_wg, sfu2_bg = linear(ks[16], ks[17], 2 * D, D)

    params = dict(
        start_wh=start_wh, start_bh=start_bh,
        start_wo=start_wo_m[:, 0], start_bo=start_bo_v[0],
        end_wh=end_wh, end_bh=end_bh,
        end_wo=end_wo_m[:, 0], end_bo=end_bo_v[0],
        sfu1_wr=sfu1_wr, sfu1_br=sfu1_br, sfu1_wg=sfu1_wg, sfu1_bg=sfu1_bg,
        sfu2_wr=sfu2_wr, sfu2_br=sfu2_br, sfu2_wg=sfu2_wg, sfu2_bg=sfu2_bg,
    )

    # One-time weight prep (fused/padded/bf16); constant-folded under jit.
    prep = prepare_pointer_params(params)
    fwd = jax.jit(partial(pointer_forward, prep=prep))

    o, zs_new = fwd(h, h_mask, zs)
    o = jax.block_until_ready(o)
    zs_new = jax.block_until_ready(zs_new)

    o_ref, zs_ref = pointer_reference(h, h_mask, zs, params)
    assert o.shape == (2, batch, c_len)
    assert zs_new.shape == (batch, D)
    # bf16 MXU inputs (f32 accumulate) vs the f32 reference -> 2e-2 tolerance.
    assert jnp.allclose(o, o_ref, atol=2e-2, rtol=2e-2), "pointer probs mismatch"
    assert jnp.allclose(zs_new, zs_ref, atol=2e-2, rtol=2e-2), "zs mismatch"

    print("KERNEL_OK")
</pallas_src>

<mosaic_0001>
module attributes {stable_mosaic.version = 11 : i64} {
  func.func @_fn_logits_kernel(%arg0: i32, %arg1: i32, %arg2: memref<1x8x32xbf16, #tpu.memory_space<vmem>>, %arg3: memref<1x1x32xbf16, #tpu.memory_space<vmem>>, %arg4: memref<96x128xbf16, #tpu.memory_space<vmem>>, %arg5: memref<1x128xf32, #tpu.memory_space<vmem>>, %arg6: memref<1x128xf32, #tpu.memory_space<vmem>>, %arg7: memref<1x1xf32, #tpu.memory_space<vmem>>, %arg8: memref<1x8x1xf32, #tpu.memory_space<vmem>>) attributes {dimension_semantics = [#tpu.dimension_semantics<parallel>, #tpu.dimension_semantics<parallel>], iteration_bounds = array<i64: 2, 1>, scalar_prefetch = 0 : i64, scratch_operands = 0 : i64, tpu.core_type = #tpu.core_type<tc>, window_params = [{transform_indices = @transform_0, window_bounds = array<i64: 1, 8, 32>}, {transform_indices = @transform_1, window_bounds = array<i64: 1, 1, 32>}, {pipeline_mode = #tpu.pipeline_mode<synchronous>, transform_indices = @transform_2, window_bounds = array<i64: 96, 128>}, {pipeline_mode = #tpu.pipeline_mode<synchronous>, transform_indices = @transform_3, window_bounds = array<i64: 1, 128>}, {pipeline_mode = #tpu.pipeline_mode<synchronous>, transform_indices = @transform_4, window_bounds = array<i64: 1, 128>}, {pipeline_mode = #tpu.pipeline_mode<synchronous>, transform_indices = @transform_5, window_bounds = array<i64: 1, 1>}, {transform_indices = @transform_6, window_bounds = array<i64: 1, 8, 1>}]} {
    %c0 = arith.constant 0 : index
    %c0_0 = arith.constant 0 : index
    %c0_1 = arith.constant 0 : index
    %0 = vector.load %arg2[%c0, %c0_0, %c0_1] : memref<1x8x32xbf16, #tpu.memory_space<vmem>>, vector<1x8x32xbf16>
    %1 = vector.shape_cast %0 : vector<1x8x32xbf16> to vector<8x32xbf16>
    %c0_2 = arith.constant 0 : index
    %c0_3 = arith.constant 0 : index
    %c0_4 = arith.constant 0 : index
    %2 = vector.load %arg3[%c0_2, %c0_3, %c0_4] : memref<1x1x32xbf16, #tpu.memory_space<vmem>>, vector<1x1x32xbf16>
    %3 = vector.shape_cast %2 : vector<1x1x32xbf16> to vector<1x32xbf16>
    %4 = vector.shape_cast %3 : vector<1x32xbf16> to vector<1x32xbf16>
    %5 = vector.broadcast %4 : vector<1x32xbf16> to vector<8x32xbf16>
    %6 = arith.mulf %1, %5 : vector<8x32xbf16>
    %7 = tpu.concatenate %1, %5, %6 in 1 : vector<8x32xbf16>, vector<8x32xbf16>, vector<8x32xbf16> -> vector<8x96xbf16>
    %c0_5 = arith.constant 0 : index
    %c0_6 = arith.constant 0 : index
    %8 = vector.load %arg4[%c0_5, %c0_6] : memref<96x128xbf16, #tpu.memory_space<vmem>>, vector<96x128xbf16>
    %cst = arith.constant dense<0.000000e+00> : vector<8x128xf32>
    %9 = tpu.matmul %7, %8, %cst {dimension_numbers = #tpu.dot_dimension_numbers<[1], [0], [0], [1], [0, 0, 1, 1], [], []>} : vector<8x96xbf16>, vector<96x128xbf16>, vector<8x128xf32> -> vector<8x128xf32>
    %c0_7 = arith.constant 0 : index
    %c0_8 = arith.constant 0 : index
    %10 = vector.load %arg5[%c0_7, %c0_8] : memref<1x128xf32, #tpu.memory_space<vmem>>, vector<1x128xf32>
    %11 = vector.broadcast %10 : vector<1x128xf32> to vector<8x128xf32>
    %12 = arith.addf %9, %11 : vector<8x128xf32>
    %cst_9 = arith.constant 0.000000e+00 : f32
    %13 = vector.broadcast %cst_9 : f32 to vector<8x128xf32>
    %14 = arith.maximumf %12, %13 : vector<8x128xf32>
    %c0_10 = arith.constant 0 : index
    %c0_11 = arith.constant 0 : index
    %15 = vector.load %arg6[%c0_10, %c0_11] : memref<1x128xf32, #tpu.memory_space<vmem>>, vector<1x128xf32>
    %16 = vector.broadcast %15 : vector<1x128xf32> to vector<8x128xf32>
    %17 = arith.mulf %14, %16 : vector<8x128xf32>
    %cst_12 = arith.constant dense<0.000000e+00> : vector<8xf32>
    %18 = vector.multi_reduction <add>, %17, %cst_12 [1] : vector<8x128xf32> to vector<8xf32>
    %19 = vector.shape_cast %18 : vector<8xf32> to vector<8x1xf32>
    %c0_13 = arith.constant 0 : index
    %c0_14 = arith.constant 0 : index
    %20 = vector.load %arg7[%c0_13, %c0_14] : memref<1x1xf32, #tpu.memory_space<vmem>>, vector<1x1xf32>
    %21 = vector.broadcast %20 : vector<1x1xf32> to vector<8x1xf32>
    %22 = arith.addf %19, %21 : vector<8x1xf32>
    %c0_15 = arith.constant 0 : index
    %c0_16 = arith.constant 0 : index
    %c0_17 = arith.constant 0 : index
    %23 = vector.load %arg8[%c0_15, %c0_16, %c0_17] : memref<1x8x1xf32, #tpu.memory_space<vmem>>, vector<1x8x1xf32>
    %24 = vector.shape_cast %23 : vector<1x8x1xf32> to vector<8x1xf32>
    %25 = vector.shape_cast %22 : vector<8x1xf32> to vector<1x8x1xf32>
    tpu.vector_store %arg8[%c0_15, %c0_16, %c0_17], %25 {strides = array<i32>} : memref<1x8x1xf32, #tpu.memory_space<vmem>>, vector<1x8x1xf32>,
    return
  }
  func.func @transform_0(%arg0: i32, %arg1: i32) -> (i32, i32, i32) {
    %c0_i32 = arith.constant 0 : i32
    %c0_i32_0 = arith.constant 0 : i32
    return %arg0, %arg1, %c0_i32 : i32, i32, i32
  }
  func.func @transform_1(%arg0: i32, %arg1: i32) -> (i32, i32, i32) {
    %c0_i32 = arith.constant 0 : i32
    %c0_i32_0 = arith.constant 0 : i32
    %c0_i32_1 = arith.constant 0 : i32
    return %arg0, %c0_i32, %c0_i32_0 : i32, i32, i32
  }
  func.func @transform_2(%arg0: i32, %arg1: i32) -> (i32, i32) {
    %c0_i32 = arith.constant 0 : i32
    %c0_i32_0 = arith.constant 0 : i32
    %c0_i32_1 = arith.constant 0 : i32
    return %c0_i32, %c0_i32_0 : i32, i32
  }
  func.func @transform_3(%arg0: i32, %arg1: i32) -> (i32, i32) {
    %c0_i32 = arith.constant 0 : i32
    %c0_i32_0 = arith.constant 0 : i32
    %c0_i32_1 = arith.constant 0 : i32
    return %c0_i32, %c0_i32_0 : i32, i32
  }
  func.func @transform_4(%arg0: i32, %arg1: i32) -> (i32, i32) {
    %c0_i32 = arith.constant 0 : i32
    %c0_i32_0 = arith.constant 0 : i32
    %c0_i32_1 = arith.constant 0 : i32
    return %c0_i32, %c0_i32_0 : i32, i32
  }
  func.func @transform_5(%arg0: i32, %arg1: i32) -> (i32, i32) {
    %c0_i32 = arith.constant 0 : i32
    %c0_i32_0 = arith.constant 0 : i32
    %c0_i32_1 = arith.constant 0 : i32
    return %c0_i32, %c0_i32_0 : i32, i32
  }
  func.func @transform_6(%arg0: i32, %arg1: i32) -> (i32, i32, i32) {
    %c0_i32 = arith.constant 0 : i32
    %c0_i32_0 = arith.constant 0 : i32
    return %arg0, %arg1, %c0_i32 : i32, i32, i32
  }
}

module attributes {stable_mosaic.version = 11 : i64} {
  func.func @_sfu_kernel(%arg0: i32, %arg1: memref<8x32xf32, #tpu.memory_space<vmem>>, %arg2: memref<8x32xbf16, #tpu.memory_space<vmem>>, %arg3: memref<64x256xbf16, #tpu.memory_space<vmem>>, %arg4: memref<1x256xf32, #tpu.memory_space<vmem>>, %arg5: memref<8x128xf32, #tpu.memory_space<vmem>>) attributes {dimension_semantics = [#tpu.dimension_semantics<parallel>], iteration_bounds = array<i64: 1>, scalar_prefetch = 0 : i64, scratch_operands = 0 : i64, tpu.core_type = #tpu.core_type<tc>, window_params = [{transform_indices = @transform_0, window_bounds = array<i64: 8, 32>}, {transform_indices = @transform_1, window_bounds = array<i64: 8, 32>}, {pipeline_mode = #tpu.pipeline_mode<synchronous>, transform_indices = @transform_2, window_bounds = array<i64: 64, 256>}, {pipeline_mode = #tpu.pipeline_mode<synchronous>, transform_indices = @transform_3, window_bounds = array<i64: 1, 256>}, {transform_indices = @transform_4, window_bounds = array<i64: 8, 128>}]} {
    %c0 = arith.constant 0 : index
    %c0_0 = arith.constant 0 : index
    %0 = vector.load %arg1[%c0, %c0_0] : memref<8x32xf32, #tpu.memory_space<vmem>>, vector<8x32xf32>
    %1 = arith.truncf %0 : vector<8x32xf32> to vector<8x32xbf16>
    %c0_1 = arith.constant 0 : index
    %c0_2 = arith.constant 0 : index
    %2 = vector.load %arg2[%c0_1, %c0_2] : memref<8x32xbf16, #tpu.memory_space<vmem>>, vector<8x32xbf16>
    %3 = tpu.concatenate %1, %2 in 1 : vector<8x32xbf16>, vector<8x32xbf16> -> vector<8x64xbf16>
    %c0_3 = arith.constant 0 : index
    %c0_4 = arith.constant 0 : index
    %4 = vector.load %arg3[%c0_3, %c0_4] : memref<64x256xbf16, #tpu.memory_space<vmem>>, vector<64x256xbf16>
    %cst = arith.constant dense<0.000000e+00> : vector<8x256xf32>
    %5 = tpu.matmul %3, %4, %cst {dimension_numbers = #tpu.dot_dimension_numbers<[1], [0], [0], [1], [0, 0, 1, 1], [], []>} : vector<8x64xbf16>, vector<64x256xbf16>, vector<8x256xf32> -> vector<8x256xf32>
    %c0_5 = arith.constant 0 : index
    %c0_6 = arith.constant 0 : index
    %6 = vector.load %arg4[%c0_5, %c0_6] : memref<1x256xf32, #tpu.memory_space<vmem>>, vector<1x256xf32>
    %7 = vector.broadcast %6 : vector<1x256xf32> to vector<8x256xf32>
    %8 = arith.addf %5, %7 : vector<8x256xf32>
    %9 = vector.extract_strided_slice %8 {offsets = [0, 0], sizes = [8, 128], strides = [1, 1]} : vector<8x256xf32> to vector<8x128xf32>
    %10 = math.tanh %9 : vector<8x128xf32>
    %11 = vector.extract_strided_slice %8 {offsets = [0, 128], sizes = [8, 128], strides = [1, 1]} : vector<8x256xf32> to vector<8x128xf32>
    %cst_7 = arith.constant 5.000000e-01 : f32
    %12 = vector.broadcast %cst_7 : f32 to vector<8x128xf32>
    %13 = arith.mulf %12, %11 : vector<8x128xf32>
    %14 = math.tanh %13 : vector<8x128xf32>
    %cst_8 = arith.constant 5.000000e-01 : f32
    %15 = vector.broadcast %cst_8 : f32 to vector<8x128xf32>
    %16 = arith.mulf %15, %14 : vector<8x128xf32>
    %cst_9 = arith.constant 5.000000e-01 : f32
    %17 = vector.broadcast %cst_9 : f32 to vector<8x128xf32>
    %18 = arith.addf %16, %17 : vector<8x128xf32>
    %cst_10 = arith.constant 0.000000e+00 : f32
    %19 = vector.broadcast %cst_10 : f32 to vector<8x96xf32>
    %20 = tpu.concatenate %0, %19 in 1 : vector<8x32xf32>, vector<8x96xf32> -> vector<8x128xf32>
    %21 = arith.subf %10, %20 : vector<8x128xf32>
    %22 = arith.mulf %18, %21 : vector<8x128xf32>
    %23 = arith.addf %22, %20 : vector<8x128xf32>
    %c0_11 = arith.constant 0 : index
    %c0_12 = arith.constant 0 : index
    %24 = vector.load %arg5[%c0_11, %c0_12] : memref<8x128xf32, #tpu.memory_space<vmem>>, vector<8x128xf32>
    tpu.vector_store %arg5[%c0_11, %c0_12], %23 {strides = array<i32>} : memref<8x128xf32, #tpu.memory_space<vmem>>, vector<8x128xf32>,
    return
  }
  func.func @transform_0(%arg0: i32) -> (i32, i32) {
    %c0_i32 = arith.constant 0 : i32
    %c0_i32_0 = arith.constant 0 : i32
    return %arg0, %c0_i32 : i32, i32
  }
  func.func @transform_1(%arg0: i32) -> (i32, i32) {
    %c0_i32 = arith.constant 0 : i32
    %c0_i32_0 = arith.constant 0 : i32
    return %arg0, %c0_i32 : i32, i32
  }
  func.func @transform_2(%arg0: i32) -> (i32, i32) {
    %c0_i32 = arith.constant 0 : i32
    %c0_i32_0 = arith.constant 0 : i32
    %c0_i32_1 = arith.constant 0 : i32
    return %c0_i32, %c0_i32_0 : i32, i32
  }
  func.func @transform_3(%arg0: i32) -> (i32, i32) {
    %c0_i32 = arith.constant 0 : i32
    %c0_i32_0 = arith.constant 0 : i32
    %c0_i32_1 = arith.constant 0 : i32
    return %c0_i32, %c0_i32_0 : i32, i32
  }
  func.func @transform_4(%arg0: i32) -> (i32, i32) {
    %c0_i32 = arith.constant 0 : i32
    %c0_i32_0 = arith.constant 0 : i32
    return %arg0, %c0_i32 : i32, i32
  }
}

module attributes {stable_mosaic.version = 11 : i64} {
  func.func @_fn_logits_kernel(%arg0: i32, %arg1: i32, %arg2: memref<1x8x32xbf16, #tpu.memory_space<vmem>>, %arg3: memref<1x1x32xbf16, #tpu.memory_space<vmem>>, %arg4: memref<96x128xbf16, #tpu.memory_space<vmem>>, %arg5: memref<1x128xf32, #tpu.memory_space<vmem>>, %arg6: memref<1x128xf32, #tpu.memory_space<vmem>>, %arg7: memref<1x1xf32, #tpu.memory_space<vmem>>, %arg8: memref<1x8x1xf32, #tpu.memory_space<vmem>>) attributes {dimension_semantics = [#tpu.dimension_semantics<parallel>, #tpu.dimension_semantics<parallel>], iteration_bounds = array<i64: 2, 1>, scalar_prefetch = 0 : i64, scratch_operands = 0 : i64, tpu.core_type = #tpu.core_type<tc>, window_params = [{transform_indices = @transform_0, window_bounds = array<i64: 1, 8, 32>}, {transform_indices = @transform_1, window_bounds = array<i64: 1, 1, 32>}, {pipeline_mode = #tpu.pipeline_mode<synchronous>, transform_indices = @transform_2, window_bounds = array<i64: 96, 128>}, {pipeline_mode = #tpu.pipeline_mode<synchronous>, transform_indices = @transform_3, window_bounds = array<i64: 1, 128>}, {pipeline_mode = #tpu.pipeline_mode<synchronous>, transform_indices = @transform_4, window_bounds = array<i64: 1, 128>}, {pipeline_mode = #tpu.pipeline_mode<synchronous>, transform_indices = @transform_5, window_bounds = array<i64: 1, 1>}, {transform_indices = @transform_6, window_bounds = array<i64: 1, 8, 1>}]} {
    %c0 = arith.constant 0 : index
    %c0_0 = arith.constant 0 : index
    %c0_1 = arith.constant 0 : index
    %0 = vector.load %arg2[%c0, %c0_0, %c0_1] : memref<1x8x32xbf16, #tpu.memory_space<vmem>>, vector<1x8x32xbf16>
    %1 = vector.shape_cast %0 : vector<1x8x32xbf16> to vector<8x32xbf16>
    %c0_2 = arith.constant 0 : index
    %c0_3 = arith.constant 0 : index
    %c0_4 = arith.constant 0 : index
    %2 = vector.load %arg3[%c0_2, %c0_3, %c0_4] : memref<1x1x32xbf16, #tpu.memory_space<vmem>>, vector<1x1x32xbf16>
    %3 = vector.shape_cast %2 : vector<1x1x32xbf16> to vector<1x32xbf16>
    %4 = vector.shape_cast %3 : vector<1x32xbf16> to vector<1x32xbf16>
    %5 = vector.broadcast %4 : vector<1x32xbf16> to vector<8x32xbf16>
    %6 = arith.mulf %1, %5 : vector<8x32xbf16>
    %7 = tpu.concatenate %1, %5, %6 in 1 : vector<8x32xbf16>, vector<8x32xbf16>, vector<8x32xbf16> -> vector<8x96xbf16>
    %c0_5 = arith.constant 0 : index
    %c0_6 = arith.constant 0 : index
    %8 = vector.load %arg4[%c0_5, %c0_6] : memref<96x128xbf16, #tpu.memory_space<vmem>>, vector<96x128xbf16>
    %cst = arith.constant dense<0.000000e+00> : vector<8x128xf32>
    %9 = tpu.matmul %7, %8, %cst {dimension_numbers = #tpu.dot_dimension_numbers<[1], [0], [0], [1], [0, 0, 1, 1], [], []>} : vector<8x96xbf16>, vector<96x128xbf16>, vector<8x128xf32> -> vector<8x128xf32>
    %c0_7 = arith.constant 0 : index
    %c0_8 = arith.constant 0 : index
    %10 = vector.load %arg5[%c0_7, %c0_8] : memref<1x128xf32, #tpu.memory_space<vmem>>, vector<1x128xf32>
    %11 = vector.broadcast %10 : vector<1x128xf32> to vector<8x128xf32>
    %12 = arith.addf %9, %11 : vector<8x128xf32>
    %cst_9 = arith.constant 0.000000e+00 : f32
    %13 = vector.broadcast %cst_9 : f32 to vector<8x128xf32>
    %14 = arith.maximumf %12, %13 : vector<8x128xf32>
    %c0_10 = arith.constant 0 : index
    %c0_11 = arith.constant 0 : index
    %15 = vector.load %arg6[%c0_10, %c0_11] : memref<1x128xf32, #tpu.memory_space<vmem>>, vector<1x128xf32>
    %16 = vector.broadcast %15 : vector<1x128xf32> to vector<8x128xf32>
    %17 = arith.mulf %14, %16 : vector<8x128xf32>
    %cst_12 = arith.constant dense<0.000000e+00> : vector<8xf32>
    %18 = vector.multi_reduction <add>, %17, %cst_12 [1] : vector<8x128xf32> to vector<8xf32>
    %19 = vector.shape_cast %18 : vector<8xf32> to vector<8x1xf32>
    %c0_13 = arith.constant 0 : index
    %c0_14 = arith.constant 0 : index
    %20 = vector.load %arg7[%c0_13, %c0_14] : memref<1x1xf32, #tpu.memory_space<vmem>>, vector<1x1xf32>
    %21 = vector.broadcast %20 : vector<1x1xf32> to vector<8x1xf32>
    %22 = arith.addf %19, %21 : vector<8x1xf32>
    %c0_15 = arith.constant 0 : index
    %c0_16 = arith.constant 0 : index
    %c0_17 = arith.constant 0 : index
    %23 = vector.load %arg8[%c0_15, %c0_16, %c0_17] : memref<1x8x1xf32, #tpu.memory_space<vmem>>, vector<1x8x1xf32>
    %24 = vector.shape_cast %23 : vector<1x8x1xf32> to vector<8x1xf32>
    %25 = vector.shape_cast %22 : vector<8x1xf32> to vector<1x8x1xf32>
    tpu.vector_store %arg8[%c0_15, %c0_16, %c0_17], %25 {strides = array<i32>} : memref<1x8x1xf32, #tpu.memory_space<vmem>>, vector<1x8x1xf32>,
    return
  }
  func.func @transform_0(%arg0: i32, %arg1: i32) -> (i32, i32, i32) {
    %c0_i32 = arith.constant 0 : i32
    %c0_i32_0 = arith.constant 0 : i32
    return %arg0, %arg1, %c0_i32 : i32, i32, i32
  }
  func.func @transform_1(%arg0: i32, %arg1: i32) -> (i32, i32, i32) {
    %c0_i32 = arith.constant 0 : i32
    %c0_i32_0 = arith.constant 0 : i32
    %c0_i32_1 = arith.constant 0 : i32
    return %arg0, %c0_i32, %c0_i32_0 : i32, i32, i32
  }
  func.func @transform_2(%arg0: i32, %arg1: i32) -> (i32, i32) {
    %c0_i32 = arith.constant 0 : i32
    %c0_i32_0 = arith.constant 0 : i32
    %c0_i32_1 = arith.constant 0 : i32
    return %c0_i32, %c0_i32_0 : i32, i32
  }
  func.func @transform_3(%arg0: i32, %arg1: i32) -> (i32, i32) {
    %c0_i32 = arith.constant 0 : i32
    %c0_i32_0 = arith.constant 0 : i32
    %c0_i32_1 = arith.constant 0 : i32
    return %c0_i32, %c0_i32_0 : i32, i32
  }
  func.func @transform_4(%arg0: i32, %arg1: i32) -> (i32, i32) {
    %c0_i32 = arith.constant 0 : i32
    %c0_i32_0 = arith.constant 0 : i32
    %c0_i32_1 = arith.constant 0 : i32
    return %c0_i32, %c0_i32_0 : i32, i32
  }
  func.func @transform_5(%arg0: i32, %arg1: i32) -> (i32, i32) {
    %c0_i32 = arith.constant 0 : i32
    %c0_i32_0 = arith.constant 0 : i32
    %c0_i32_1 = arith.constant 0 : i32
    return %c0_i32, %c0_i32_0 : i32, i32
  }
  func.func @transform_6(%arg0: i32, %arg1: i32) -> (i32, i32, i32) {
    %c0_i32 = arith.constant 0 : i32
    %c0_i32_0 = arith.constant 0 : i32
    return %arg0, %arg1, %c0_i32 : i32, i32, i32
  }
}

module attributes {stable_mosaic.version = 11 : i64} {
  func.func @_sfu_kernel(%arg0: i32, %arg1: memref<8x32xf32, #tpu.memory_space<vmem>>, %arg2: memref<8x32xbf16, #tpu.memory_space<vmem>>, %arg3: memref<64x256xbf16, #tpu.memory_space<vmem>>, %arg4: memref<1x256xf32, #tpu.memory_space<vmem>>, %arg5: memref<8x128xf32, #tpu.memory_space<vmem>>) attributes {dimension_semantics = [#tpu.dimension_semantics<parallel>], iteration_bounds = array<i64: 1>, scalar_prefetch = 0 : i64, scratch_operands = 0 : i64, tpu.core_type = #tpu.core_type<tc>, window_params = [{transform_indices = @transform_0, window_bounds = array<i64: 8, 32>}, {transform_indices = @transform_1, window_bounds = array<i64: 8, 32>}, {pipeline_mode = #tpu.pipeline_mode<synchronous>, transform_indices = @transform_2, window_bounds = array<i64: 64, 256>}, {pipeline_mode = #tpu.pipeline_mode<synchronous>, transform_indices = @transform_3, window_bounds = array<i64: 1, 256>}, {transform_indices = @transform_4, window_bounds = array<i64: 8, 128>}]} {
    %c0 = arith.constant 0 : index
    %c0_0 = arith.constant 0 : index
    %0 = vector.load %arg1[%c0, %c0_0] : memref<8x32xf32, #tpu.memory_space<vmem>>, vector<8x32xf32>
    %1 = arith.truncf %0 : vector<8x32xf32> to vector<8x32xbf16>
    %c0_1 = arith.constant 0 : index
    %c0_2 = arith.constant 0 : index
    %2 = vector.load %arg2[%c0_1, %c0_2] : memref<8x32xbf16, #tpu.memory_space<vmem>>, vector<8x32xbf16>
    %3 = tpu.concatenate %1, %2 in 1 : vector<8x32xbf16>, vector<8x32xbf16> -> vector<8x64xbf16>
    %c0_3 = arith.constant 0 : index
    %c0_4 = arith.constant 0 : index
    %4 = vector.load %arg3[%c0_3, %c0_4] : memref<64x256xbf16, #tpu.memory_space<vmem>>, vector<64x256xbf16>
    %cst = arith.constant dense<0.000000e+00> : vector<8x256xf32>
    %5 = tpu.matmul %3, %4, %cst {dimension_numbers = #tpu.dot_dimension_numbers<[1], [0], [0], [1], [0, 0, 1, 1], [], []>} : vector<8x64xbf16>, vector<64x256xbf16>, vector<8x256xf32> -> vector<8x256xf32>
    %c0_5 = arith.constant 0 : index
    %c0_6 = arith.constant 0 : index
    %6 = vector.load %arg4[%c0_5, %c0_6] : memref<1x256xf32, #tpu.memory_space<vmem>>, vector<1x256xf32>
    %7 = vector.broadcast %6 : vector<1x256xf32> to vector<8x256xf32>
    %8 = arith.addf %5, %7 : vector<8x256xf32>
    %9 = vector.extract_strided_slice %8 {offsets = [0, 0], sizes = [8, 128], strides = [1, 1]} : vector<8x256xf32> to vector<8x128xf32>
    %10 = math.tanh %9 : vector<8x128xf32>
    %11 = vector.extract_strided_slice %8 {offsets = [0, 128], sizes = [8, 128], strides = [1, 1]} : vector<8x256xf32> to vector<8x128xf32>
    %cst_7 = arith.constant 5.000000e-01 : f32
    %12 = vector.broadcast %cst_7 : f32 to vector<8x128xf32>
    %13 = arith.mulf %12, %11 : vector<8x128xf32>
    %14 = math.tanh %13 : vector<8x128xf32>
    %cst_8 = arith.constant 5.000000e-01 : f32
    %15 = vector.broadcast %cst_8 : f32 to vector<8x128xf32>
    %16 = arith.mulf %15, %14 : vector<8x128xf32>
    %cst_9 = arith.constant 5.000000e-01 : f32
    %17 = vector.broadcast %cst_9 : f32 to vector<8x128xf32>
    %18 = arith.addf %16, %17 : vector<8x128xf32>
    %cst_10 = arith.constant 0.000000e+00 : f32
    %19 = vector.broadcast %cst_10 : f32 to vector<8x96xf32>
    %20 = tpu.concatenate %0, %19 in 1 : vector<8x32xf32>, vector<8x96xf32> -> vector<8x128xf32>
    %21 = arith.subf %10, %20 : vector<8x128xf32>
    %22 = arith.mulf %18, %21 : vector<8x128xf32>
    %23 = arith.addf %22, %20 : vector<8x128xf32>
    %c0_11 = arith.constant 0 : index
    %c0_12 = arith.constant 0 : index
    %24 = vector.load %arg5[%c0_11, %c0_12] : memref<8x128xf32, #tpu.memory_space<vmem>>, vector<8x128xf32>
    tpu.vector_store %arg5[%c0_11, %c0_12], %23 {strides = array<i32>} : memref<8x128xf32, #tpu.memory_space<vmem>>, vector<8x128xf32>,
    return
  }
  func.func @transform_0(%arg0: i32) -> (i32, i32) {
    %c0_i32 = arith.constant 0 : i32
    %c0_i32_0 = arith.constant 0 : i32
    return %arg0, %c0_i32 : i32, i32
  }
  func.func @transform_1(%arg0: i32) -> (i32, i32) {
    %c0_i32 = arith.constant 0 : i32
    %c0_i32_0 = arith.constant 0 : i32
    return %arg0, %c0_i32 : i32, i32
  }
  func.func @transform_2(%arg0: i32) -> (i32, i32) {
    %c0_i32 = arith.constant 0 : i32
    %c0_i32_0 = arith.constant 0 : i32
    %c0_i32_1 = arith.constant 0 : i32
    return %c0_i32, %c0_i32_0 : i32, i32
  }
  func.func @transform_3(%arg0: i32) -> (i32, i32) {
    %c0_i32 = arith.constant 0 : i32
    %c0_i32_0 = arith.constant 0 : i32
    %c0_i32_1 = arith.constant 0 : i32
    return %c0_i32, %c0_i32_0 : i32, i32
  }
  func.func @transform_4(%arg0: i32) -> (i32, i32) {
    %c0_i32 = arith.constant 0 : i32
    %c0_i32_0 = arith.constant 0 : i32
    return %arg0, %c0_i32 : i32, i32
  }
}

</mosaic_0001>

<bundles_post_ra>
// kernel: pointer_forward.6
= control target key start
LH: loop header
LB: loop body
LE: loop exit
PB: predicated region body
PF: predicated region fallthrough
CT: control target
= control target key end

     0   :  { %s619_s23 = smov 0   ;;  %s621_s24 = smov 0   ;;  %s684_s0 = inlined_call_operand.vmem [shape: bf16[2,8,32], index: 0, kind: input, shape index: {}]   ;;  %s685_s1 = inlined_call_operand.vmem [shape: bf16[2,1,32], index: 1, kind: input, shape index: {}]   ;;  %s686_s2 = inlined_call_operand.vmem [shape: bf16[96,128], index: 2, kind: input, shape index: {}]   ;;  %s687_s3 = inlined_call_operand.vmem [shape: f32[1,128], index: 3, kind: input, shape index: {}]   ;;  %s688_s4 = inlined_call_operand.vmem [shape: f32[1,128], index: 4, kind: input, shape index: {}]   ;;  %s689_s5 = inlined_call_operand.<no memory space> [shape: f32[1,1], index: 5, kind: input, shape index: {}]   ;;  %s690_s6 = inlined_call_operand.vmem [shape: f32[2,8,1], index: 6, kind: output, shape index: {}]  }
   0x1   :  { %v11_v0 = vstv %s689_s5  ;;  %s623_s25 = smov 0  }
   0x2   :  { %12 = vst [vmem:[#allocation2] sm:$0x1] %v11_v0 }
   0x3 LB: > { %s30_s5 = sadd.s32 1, %s573_s24  ;;  %p490_p0 = scmp.ge.s32.totalorder %s577_s25, 1  ;;  %s577_s25 = sphi %s623_s25, %s18_s25   ;;  %s573_s24 = sphi %s621_s24, %s692_s24   ;;  %s569_s23 = sphi %s619_s23, %s691_s23  }
   0x4   : > { %p32_p1 = scmp.ge.s32.totalorder %s30_s5, 2  ;;  %p240_p2 = scmp.lt.s32.totalorder %s577_s25, 3 }
   0x6   : > { %s694_s5 = smov (%p32_p1, %s30_s5), 0  ;;  %p241_p3 = pnand %p490_p0, %p240_p2 }
   0x7   : > { %p277_p4 = scmp.lt.s32.totalorder (!%p241_p3), %s569_s23, 1  ;;  %s579_s15 = smov (!%p241_p3), 32  }
   0x8   : > { %244 = sbr.rel (%p241_p3) target bundleno = 397 (0x18d), region = 44  ;;  %s580_s18 = smov (!%p241_p3), 64  }
   0xd   : > { %v525_v1 = vld [vmem:[%s686_s2 + $0x28] sm:$0xff]  ;;  %s696_s23 = smov (!%p277_p4, %s569_s23), 1  ;;  %v524_v2 = vld [vmem:[%s686_s2 + $0x20] sm:$0xff]  ;;  %v523_v6 = vld [vmem:[%s686_s2 + $0x18] sm:$0xff]  ;;  %vm313_vm0 = vcmask 261120   ;;  %vm317_vm1 = vcmask 523264  }
   0xe   : > { %377 = vmatpush.bf16.msra.mxu0 %v525_v1  ;;  %s286_s8 = scalar_lea.vmem %s685_s1, %s696_s23  ;;  %s491_s9 = sshll.u32 %s696_s23, 2  ;;  %v522_v10 = vld [vmem:[%s686_s2 + $0x10] sm:$0xff]  ;;  %v521_v15 = vld [vmem:[%s686_s2 + $0x8] sm:$0xff]  ;;  %v520_v16 = vld [vmem:[%s686_s2] sm:$0xff]  ;;  %vm372_vm2 = vcmask 785408   ;;  %vm401_vm3 = vcmask 7168  }
   0xf   : > { %v296_v3 = vld [vmem:[%s286_s8] sm:$0x1]  ;;  %s283_s12 = scalar_lea.vmem %s684_s0, %s491_s9  ;;  %s492_s30 = sshll.u32 %s696_s23, 3 }
  0x10   : > { %v298_v4 = vpack.i.b16 %v296_v3, %v296_v3  ;;  %v295_v5 = vld [vmem:[%s283_s12] sm:$0xf]  ;;  %s293_s9 = scalar_lea.vmem %s690_s6, %s492_s30 }
  0x11   : > { %v301_v8 = vunpack.c.l.bf16 %v295_v5  ;;  %v552_v21 = vld [vmem:[%s687_s3] ss:$0 sm:$0xff] }
  0x12   : > { %378 = vmatpush.bf16.msra.mxu0 %v524_v2  ;;  %v300_v7 = vperm.slane %v298_v4, 0  ;;  %v553_v24 = vld [vmem:[%s688_s4] ss:$0 sm:$0xff] }
  0x13   : > { %v554_v28 = vld [vmem:[#allocation2] ss:$0 sm:$0xff] }
  0x14   : > { %306 = vrot.lane.b32.xlu0 %v300_v7, %s579_s15  ;;  %v302_v9 = vunpack.c.l.bf16 %v300_v7 }
  0x16   : > { %379 = vmatpush.bf16.msra.mxu0 %v523_v6  ;;  %v303_v11 = vmul.f32 %v302_v9, %v301_v8 }
  0x18   : > { %v304_v12 = vpack.c.bf16 %v303_v11, %v303_v11 }
  0x1a   : > { %380 = vmatpush.bf16.msra.mxu0 %v522_v10  ;;  %v309_v13 = vunpack.c.l.b16 %v304_v12 }
  0x1c   : > { %v310_v14 = vpack.c.b16 %v309_v13, %v309_v13 }
  0x1e   : > { %311 = vrot.lane.b32.xlu0 %v310_v14, %s580_s18  ;;  %381 = vmatpush.bf16.msra.mxu0 %v521_v15 }
  0x22   : > { %382 = vmatpush.bf16.msra.mxu0 %v520_v16 }
  0x86   : > { %v307_v17 = vpop.permute.xlu0 %306 }
  0x87   : > { %v316_v18 = vsel %vm313_vm0, %v295_v5, %v307_v17 }
  0x90   : > { %v312_v19 = vpop.permute.xlu0 %311 }
  0x91   : > { %v319_v20 = vsel %vm317_vm1, %v316_v18, %v312_v19 }
  0x92   : > { %517 = vmatmul.msk.bf16.vlgmr.msra.gmra.mxu0 %vm372_vm2, %v319_v20 }
 0x10f   : > { %v384_v22 = vpop.f32.mrf.mxu0 }
 0x110   : > { %v385_v23 = vadd.f32 %v552_v21, %v384_v22 }
 0x112   : > { %v388_v25 = vmax.f32 %v385_v23, 0.0 }
 0x114   : > { %v393_v26 = vmul.f32 %v553_v24, %v388_v25 }
 0x116   : > { %394 = vadd.xlane.f32.xlu1 %v393_v26 }
 0x117   : > { %v386_v27 = vpop.f32.mrf.mxu0 }
 0x189   : > { %v395_v29 = vpop.xlane.xlu1 %394 }
 0x18a   : > { %v400_v30 = vadd.f32 %v554_v28, %v395_v29 }
 0x18c   : > { %402 = vst.msk [vmem:[%s293_s9] sm:$0xff] %vm401_vm3, %v400_v30 }
 0x18d PF: > { %s18_s25 = sadd.s32 1, %s577_s25   ;;  %s691_s23 = smov %s573_s24 }
 0x18e   : > { %p15_p5 = scmp.ge.s32.totalorder %s18_s25, 4   ;;  %s692_s24 = smov %s694_s5 }
 0x190   :  { %17 = sbr.rel (!%p15_p5) target bundleno = 3 (0x3), region = 77 }

// kernel: pointer_forward.4
= control target key start
LH: loop header
LB: loop body
LE: loop exit
PB: predicated region body
PF: predicated region fallthrough
CT: control target
= control target key end

     0   :  { %s752_s0 = inlined_call_operand.vmem [shape: bf16[2,8,32], index: 0, kind: input, shape index: {}]   ;;  %s753_s1 = inlined_call_operand.vmem [shape: bf16[2,1,32], index: 1, kind: input, shape index: {}]   ;;  %s754_s2 = inlined_call_operand.hbm [shape: bf16[96,128], index: 2, kind: input, shape index: {}]   ;;  %s755_s3 = inlined_call_operand.vmem [shape: f32[1,128], index: 3, kind: input, shape index: {}]   ;;  %s756_s4 = inlined_call_operand.vmem [shape: f32[1,128], index: 4, kind: input, shape index: {}]   ;;  %s757_s5 = inlined_call_operand.<no memory space> [shape: f32[1,1], index: 5, kind: input, shape index: {}]   ;;  %s758_s6 = inlined_call_operand.vmem [shape: f32[2,8,1], index: 6, kind: output, shape index: {}]  }
   0x1   :  { %v11_v0 = vstv %s757_s5 }
   0x2   :  { %12 = vst [vmem:[#allocation2] sm:$0x1] %v11_v0 }
   0x3   :  { %13 = vsyncpa [#allocation4], 0  ;;  %s701_s23 = smov 0   ;;  %s703_s24 = smov 0  }
   0x4   :  { %s705_s25 = smov 0  }
   0x5 LB: > { %s516_s5 = sadd.s32 4294967295, %s656_s25   ;;  %s31_s26 = sadd.s32 1, %s652_s24  ;;  %s656_s25 = sphi %s705_s25, %s19_s25   ;;  %s652_s24 = sphi %s703_s24, %s760_s24   ;;  %s648_s23 = sphi %s701_s23, %s759_s23  }
   0x6   : > { %p33_p0 = scmp.ge.s32.totalorder %s31_s26, 2  ;;  %p518_p1 = scmp.ge.s32.totalorder %s656_s25, 1 }
   0x7   : > { %p202_p2 = scmp.lt.s32.totalorder %s656_s25, 3  ;;  %p566_p4 = scmp.eq.s32.totalorder %s516_s5, 0 }
   0x8   : > { %s762_s26 = smov (%p33_p0, %s31_s26), 0  ;;  %s213_s29 = sshll.u32 %s754_s2, 4  ;;  %s214_s29 = int_to_ptr.hbm [resolvable:$true] %s213_s29 }
   0x9   : > { %p203_p3 = pnand %p518_p1, %p202_p2  ;;  %s658_s30 = smov [#allocation3]  }
   0xa   : > { %s215_s7 = sshll.u32 %s658_s30, 4  ;;  %s659_s8 = smov 64   ;;  %s216_s7 = int_to_ptr.vmem [resolvable:$true] %s215_s7 }
   0xb   : > { %p562_p5 = pneg %p203_p3  ;;  %s660_s9 = smov 4  }
   0xc   : > { %256 = sbr.rel (%p203_p3) target bundleno = 404 (0x194), region = 44 }
   0xd   : > { %p563_p6 = pnand %p566_p4, %p562_p5 }
   0xf   : > { %565 = dma.hbm_to_vmem [thread:$0]  (!%p563_p6), %s214_s29, 768, %s216_s7, [#allocation4], %s659_s8, %s659_s8, %s660_s9  }
  0x11   : > { %643 = dma.done.wait (%p566_p4), [#allocation4], 768  }
  0x12   : > { %645 = vsyncadd (%p566_p4), [#allocation4], 4294966528  ;;  %p294_p7 = scmp.lt.s32.totalorder %s648_s23, 1  ;;  %v557_v3 = vld [vmem:[#allocation3 + $0x28] sm:$0xff]  ;;  %v556_v5 = vld [vmem:[#allocation3 + $0x20] sm:$0xff]  ;;  %s661_s17 = smov 32  }
  0x13   : > { %394 = vmatpush.bf16.msra.mxu0 %v557_v3  ;;  %v555_v9 = vld [vmem:[#allocation3 + $0x18] sm:$0xff]  ;;  %v554_v12 = vld [vmem:[#allocation3 + $0x10] sm:$0xff]  ;;  %s662_s18 = smov 64   ;;  %v553_v15 = vld [vmem:[#allocation3 + $0x8] sm:$0xff]  ;;  %vm330_vm0 = vcmask 261120   ;;  %vm334_vm1 = vcmask 523264  }
  0x14   : > { %s764_s23 = smov (!%p294_p7, %s648_s23), 1  ;;  %v552_v16 = vld [vmem:[#allocation3] sm:$0xff]  ;;  %vm389_vm2 = vcmask 785408   ;;  %v597_v21 = vld [vmem:[%s755_s3] ss:$0 sm:$0xff]  ;;  %vm418_vm3 = vcmask 7168  }
  0x15   : > { %s303_s12 = scalar_lea.vmem %s753_s1, %s764_s23  ;;  %s523_s13 = sshll.u32 %s764_s23, 2  ;;  %v598_v24 = vld [vmem:[%s756_s4] ss:$0 sm:$0xff] }
  0x16   : > { %s300_s16 = scalar_lea.vmem %s752_s0, %s523_s13  ;;  %v313_v1 = vld [vmem:[%s303_s12] sm:$0x1]  ;;  %s524_s5 = sshll.u32 %s764_s23, 3 }
  0x17   : > { %v312_v2 = vld [vmem:[%s300_s16] sm:$0xf]  ;;  %v315_v4 = vpack.i.b16 %v313_v1, %v313_v1  ;;  %395 = vmatpush.bf16.msra.mxu0 %v556_v5  ;;  %s310_s29 = scalar_lea.vmem %s758_s6, %s524_s5 }
  0x18   : > { %v318_v7 = vunpack.c.l.bf16 %v312_v2  ;;  %v599_v28 = vld [vmem:[#allocation2] ss:$0 sm:$0xff] }
  0x19   : > { %v317_v6 = vperm.slane %v315_v4, 0 }
  0x1b   : > { %323 = vrot.lane.b32.xlu0 %v317_v6, %s661_s17  ;;  %v319_v8 = vunpack.c.l.bf16 %v317_v6  ;;  %396 = vmatpush.bf16.msra.mxu0 %v555_v9 }
  0x1d   : > { %v320_v10 = vmul.f32 %v319_v8, %v318_v7 }
  0x1f   : > { %v321_v11 = vpack.c.bf16 %v320_v10, %v320_v10  ;;  %397 = vmatpush.bf16.msra.mxu0 %v554_v12 }
  0x21   : > { %v326_v13 = vunpack.c.l.b16 %v321_v11 }
  0x23   : > { %v327_v14 = vpack.c.b16 %v326_v13, %v326_v13  ;;  %398 = vmatpush.bf16.msra.mxu0 %v553_v15 }
  0x25   : > { %328 = vrot.lane.b32.xlu0 %v327_v14, %s662_s18 }
  0x27   : > { %399 = vmatpush.bf16.msra.mxu0 %v552_v16 }
  0x8d   : > { %v324_v17 = vpop.permute.xlu0 %323 }
  0x8e   : > { %v333_v18 = vsel %vm330_vm0, %v312_v2, %v324_v17 }
  0x97   : > { %v329_v19 = vpop.permute.xlu0 %328 }
  0x98   : > { %v336_v20 = vsel %vm334_vm1, %v333_v18, %v329_v19 }
  0x99   : > { %549 = vmatmul.msk.bf16.vlgmr.msra.gmra.mxu0 %vm389_vm2, %v336_v20 }
 0x116   : > { %v401_v22 = vpop.f32.mrf.mxu0 }
 0x117   : > { %v402_v23 = vadd.f32 %v597_v21, %v401_v22 }
 0x119   : > { %v405_v25 = vmax.f32 %v402_v23, 0.0 }
 0x11b   : > { %v410_v26 = vmul.f32 %v598_v24, %v405_v25 }
 0x11d   : > { %411 = vadd.xlane.f32.xlu1 %v410_v26 }
 0x11e   : > { %v403_v27 = vpop.f32.mrf.mxu0 }
 0x190   : > { %v412_v29 = vpop.xlane.xlu1 %411 }
 0x191   : > { %v417_v30 = vadd.f32 %v599_v28, %v412_v29 }
 0x193   : > { %419 = vst.msk [vmem:[%s310_s29] sm:$0xff] %vm418_vm3, %v417_v30 }
 0x194 PF: > { %s19_s25 = sadd.s32 1, %s656_s25   ;;  %s759_s23 = smov %s652_s24 }
 0x195   : > { %p16_p8 = scmp.ge.s32.totalorder %s19_s25, 4   ;;  %s760_s24 = smov %s762_s26 }
 0x197   :  { %18 = sbr.rel (!%p16_p8) target bundleno = 5 (0x5), region = 82 }
 0x19c   :  { %445 = vsyncpa [#allocation4], 1 }
 0x19d   :  { %447 = vsyncpa [#allocation4 + $0x1], 1 }

// kernel: pointer_forward.7
= control target key start
LH: loop header
LB: loop body
LE: loop exit
PB: predicated region body
PF: predicated region fallthrough
CT: control target
= control target key end

     0   :  { %s174_s10 = smov 32   ;;  %vm26_vm0 = vcmask 261120   ;;  %vm84_vm1 = vcmask 523264   ;;  %s260_s1 = inlined_call_operand.vmem [shape: bf16[8,32], index: 1, kind: input, shape index: {}]   ;;  %s261_s2 = inlined_call_operand.vmem [shape: bf16[64,256], index: 2, kind: input, shape index: {}]   ;;  %s262_s0 = inlined_call_operand.vmem [shape: f32[8,32], index: 0, kind: input, shape index: {}]   ;;  %s263_s3 = inlined_call_operand.vmem [shape: f32[1,256], index: 3, kind: input, shape index: {}]   ;;  %s264_s4 = inlined_call_operand.vmem [shape: f32[8,128], index: 4, kind: output, shape index: {}]  }
   0x1   :  { %v20_v0 = vld [vmem:[%s260_s1] sm:$0xf]  ;;  %v153_v1 = vld [vmem:[%s261_s2 + $0x30] sm:$0xf]  ;;  %v168_v2 = vld [vmem:[%s261_s2 + $0x34] sm:$0xf0] }
   0x2   :  { %v22_v3 = vunpack.c.l.b16 %v20_v0  ;;  %v154_v4 = vor.u32 %v168_v2, %v153_v1  ;;  %v167_v5 = vld [vmem:[%s261_s2 + $0x34] sm:$0xf]  ;;  %v155_v6 = vld [vmem:[%s261_s2 + $0x38] sm:$0xf0]  ;;  %v145_v7 = vld [vmem:[%s261_s2 + $0x20] sm:$0xf] }
   0x3   :  { %v158_v8 = vor.u32 %v167_v5, %v155_v6  ;;  %v166_v9 = vld [vmem:[%s261_s2 + $0x24] sm:$0xf0]  ;;  %v165_v10 = vld [vmem:[%s261_s2 + $0x24] sm:$0xf]  ;;  %v147_v11 = vld [vmem:[%s261_s2 + $0x28] sm:$0xf0] }
   0x4   :  { %v23_v12 = vpack.c.b16 %v22_v3, %v22_v3  ;;  %91 = vmatpush.bf16.msra.mxu0 %v154_v4  ;;  %v146_v13 = vor.u32 %v166_v9, %v145_v7  ;;  %v150_v14 = vor.u32 %v165_v10, %v147_v11  ;;  %v137_v15 = vld [vmem:[%s261_s2 + $0x10] sm:$0xf]  ;;  %v164_v16 = vld [vmem:[%s261_s2 + $0x14] sm:$0xf0]  ;;  %v163_v17 = vld [vmem:[%s261_s2 + $0x14] sm:$0xf] }
   0x5   :  { %104 = vmatpush.bf16.msra.mxu1 %v158_v8  ;;  %v139_v18 = vld [vmem:[%s261_s2 + $0x18] sm:$0xf0]  ;;  %v138_v19 = vor.u32 %v164_v16, %v137_v15  ;;  %v129_v21 = vld [vmem:[%s261_s2] sm:$0xf]  ;;  %v162_v22 = vld [vmem:[%s261_s2 + $0x4] sm:$0xf0] }
   0x6   :  { %24 = vrot.lane.b32.xlu0 %v23_v12, %s174_s10  ;;  %v142_v20 = vor.u32 %v163_v17, %v139_v18  ;;  %v161_v23 = vld [vmem:[%s261_s2 + $0x4] sm:$0xf]  ;;  %v131_v24 = vld [vmem:[%s261_s2 + $0x8] sm:$0xf0]  ;;  %v130_v25 = vor.u32 %v162_v22, %v129_v21  ;;  %v38_v32 = vld [vmem:[%s263_s3] sm:$0x3] }
   0x7   :  { %v134_v26 = vor.u32 %v161_v23, %v131_v24  ;;  %v18_v27 = vld [vmem:[%s262_s0] sm:$0xff]  ;;  %v40_v33 = vperm.slane %v38_v32, 0  ;;  %v41_v34 = vperm.slane %v38_v32, 1 }
   0x8   :  { %92 = vmatpush.bf16.msra.mxu0 %v146_v13  ;;  %v118_v28 = vsel %vm26_vm0, %v18_v27, 0.0  ;;  %v19_v29 = vpack.c.bf16 %v18_v27, %v18_v27 }
   0x9   :  { %105 = vmatpush.bf16.msra.mxu1 %v150_v14 }
   0xc   :  { %93 = vmatpush.bf16.msra.mxu0 %v138_v19 }
   0xd   :  { %106 = vmatpush.bf16.msra.mxu1 %v142_v20 }
  0x10   :  { %94 = vmatpush.bf16.msra.mxu0 %v130_v25 }
  0x11   :  { %107 = vmatpush.bf16.msra.mxu1 %v134_v26 }
  0x78   :  { %v25_v30 = vpop.permute.xlu0 %24 }
  0x79   :  { %v29_v31 = vsel %vm26_vm0, %v19_v29, %v25_v30 }
  0x7a   :  { %159 = vmatmul.msk.bf16.vlgmr.msra.gmra.mxu0 %vm84_vm1, %v29_v31  ;;  %160 = vmatmul.msk.bf16.vlgmr.msra.gmra.mxu1 %vm84_vm1, %v29_v31 }
  0xf7   :  { %v96_v35 = vpop.f32.mrf.mxu0  ;;  %v109_v36 = vpop.f32.mrf.mxu1 }
  0xf8   :  { %v97_v37 = vadd.f32 %v96_v35, %v40_v33  ;;  %v110_v38 = vadd.f32 %v109_v36, %v41_v34 }
  0xfa   :  { %v114_v39 = vmul.f32 0.5, %v110_v38  ;;  %170 = vtanh.f32 %v97_v37 }
  0xfc   :  { %172 = vtanh.f32 %v114_v39 }
  0xff   :  { %v98_v40 = vpop.f32.mrf.mxu0  ;;  %v111_v41 = vpop.f32.mrf.mxu1 }
 0x100   :  { %v171_v42 = vpop.eup %170 }
 0x101   :  { %v119_v46 = vsub.f32 %v171_v42, %v118_v28 }
 0x102   :  { %v173_v43 = vpop.eup %172 }
 0x103   :  { %v116_v44 = vmul.f32 0.5, %v173_v43 }
 0x105   :  { %v117_v45 = vadd.f32 0.5, %v116_v44 }
 0x107   :  { %v120_v47 = vmul.f32 %v119_v46, %v117_v45 }
 0x109   :  { %v121_v48 = vadd.f32 %v120_v47, %v118_v28 }
 0x10b   :  { %122 = vst [vmem:[%s264_s4] sm:$0xff] %v121_v48 }

// kernel: pointer_forward.5
= control target key start
LH: loop header
LB: loop body
LE: loop exit
PB: predicated region body
PF: predicated region fallthrough
CT: control target
= control target key end

     0   :  { %9 = vsyncpa [#allocation3], 0  ;;  %s220_s18 = smov [#allocation2]   ;;  %s221_s20 = smov 128   ;;  %s264_s0 = inlined_call_operand.vmem [shape: f32[8,32], index: 0, kind: input, shape index: {}]   ;;  %s265_s1 = inlined_call_operand.vmem [shape: bf16[8,32], index: 1, kind: input, shape index: {}]   ;;  %s266_s2 = inlined_call_operand.hbm [shape: bf16[64,256], index: 2, kind: input, shape index: {}]   ;;  %s267_s3 = inlined_call_operand.vmem [shape: f32[1,256], index: 3, kind: input, shape index: {}]   ;;  %s268_s4 = inlined_call_operand.vmem [shape: f32[8,128], index: 4, kind: output, shape index: {}]  }
   0x1   :  { %s18_s17 = sshll.u32 %s266_s2, 4  ;;  %s20_s19 = sshll.u32 %s220_s18, 4  ;;  %s19_s17 = int_to_ptr.hbm [resolvable:$true] %s18_s17  ;;  %s21_s19 = int_to_ptr.vmem [resolvable:$true] %s20_s19 }
   0x2   :  { %s222_s21 = smov 8  }
   0x3   :  { %26 = dma.hbm_to_vmem [thread:$0]  %s19_s17, 1024, %s21_s19, [#allocation3], %s221_s20, %s221_s20, %s222_s21  }
   0x4   :  { %218 = dma.done.wait [#allocation3], 1024  }
   0x5   :  { %219 = vsyncadd [#allocation3], 4294966272  ;;  %v36_v0 = vld [vmem:[%s265_s1] sm:$0xf]  ;;  %v170_v1 = vld [vmem:[#allocation2 + $0x30] sm:$0xf] }
   0x6   :  { %v185_v2 = vld [vmem:[#allocation2 + $0x34] sm:$0xf0]  ;;  %v38_v3 = vunpack.c.l.b16 %v36_v0  ;;  %v184_v5 = vld [vmem:[#allocation2 + $0x34] sm:$0xf]  ;;  %v172_v6 = vld [vmem:[#allocation2 + $0x38] sm:$0xf0] }
   0x7   :  { %v171_v4 = vor.u32 %v185_v2, %v170_v1  ;;  %v162_v7 = vld [vmem:[#allocation2 + $0x20] sm:$0xf]  ;;  %v175_v8 = vor.u32 %v184_v5, %v172_v6  ;;  %v183_v9 = vld [vmem:[#allocation2 + $0x24] sm:$0xf0]  ;;  %v182_v10 = vld [vmem:[#allocation2 + $0x24] sm:$0xf] }
   0x8   :  { %v164_v11 = vld [vmem:[#allocation2 + $0x28] sm:$0xf0]  ;;  %v39_v12 = vpack.c.b16 %v38_v3, %v38_v3  ;;  %v163_v13 = vor.u32 %v183_v9, %v162_v7  ;;  %v154_v15 = vld [vmem:[#allocation2 + $0x10] sm:$0xf]  ;;  %v181_v16 = vld [vmem:[#allocation2 + $0x14] sm:$0xf0] }
   0x9   :  { %107 = vmatpush.bf16.msra.mxu0 %v171_v4  ;;  %120 = vmatpush.bf16.msra.mxu1 %v175_v8  ;;  %v167_v14 = vor.u32 %v182_v10, %v164_v11  ;;  %s223_s2 = smov 32   ;;  %v180_v17 = vld [vmem:[#allocation2 + $0x14] sm:$0xf]  ;;  %v156_v18 = vld [vmem:[#allocation2 + $0x18] sm:$0xf0]  ;;  %v155_v19 = vor.u32 %v181_v16, %v154_v15  ;;  %v34_v27 = vld [vmem:[%s264_s0] sm:$0xff] }
   0xa   :  { %40 = vrot.lane.b32.xlu0 %v39_v12, %s223_s2  ;;  %v159_v20 = vor.u32 %v180_v17, %v156_v18  ;;  %v146_v21 = vld [vmem:[#allocation2] sm:$0xf]  ;;  %v179_v22 = vld [vmem:[#allocation2 + $0x4] sm:$0xf0]  ;;  %v178_v23 = vld [vmem:[#allocation2 + $0x4] sm:$0xf]  ;;  %v35_v29 = vpack.c.bf16 %v34_v27, %v34_v27 }
   0xb   :  { %v148_v24 = vld [vmem:[#allocation2 + $0x8] sm:$0xf0]  ;;  %v147_v25 = vor.u32 %v179_v22, %v146_v21  ;;  %vm42_vm0 = vcmask 261120   ;;  %vm100_vm1 = vcmask 523264   ;;  %v54_v32 = vld [vmem:[%s267_s3] sm:$0x3] }
   0xc   :  { %v151_v26 = vor.u32 %v178_v23, %v148_v24  ;;  %v134_v28 = vsel %vm42_vm0, %v34_v27, 0.0  ;;  %v56_v33 = vperm.slane %v54_v32, 0  ;;  %v57_v34 = vperm.slane %v54_v32, 1 }
   0xd   :  { %108 = vmatpush.bf16.msra.mxu0 %v163_v13  ;;  %121 = vmatpush.bf16.msra.mxu1 %v167_v14 }
  0x11   :  { %109 = vmatpush.bf16.msra.mxu0 %v155_v19  ;;  %122 = vmatpush.bf16.msra.mxu1 %v159_v20 }
  0x15   :  { %110 = vmatpush.bf16.msra.mxu0 %v147_v25  ;;  %123 = vmatpush.bf16.msra.mxu1 %v151_v26 }
  0x7c   :  { %v41_v30 = vpop.permute.xlu0 %40 }
  0x7d   :  { %v45_v31 = vsel %vm42_vm0, %v35_v29, %v41_v30 }
  0x7e   :  { %176 = vmatmul.msk.bf16.vlgmr.msra.gmra.mxu0 %vm100_vm1, %v45_v31  ;;  %177 = vmatmul.msk.bf16.vlgmr.msra.gmra.mxu1 %vm100_vm1, %v45_v31 }
  0xfb   :  { %v112_v35 = vpop.f32.mrf.mxu0  ;;  %v125_v36 = vpop.f32.mrf.mxu1 }
  0xfc   :  { %v113_v37 = vadd.f32 %v112_v35, %v56_v33  ;;  %v126_v38 = vadd.f32 %v125_v36, %v57_v34 }
  0xfe   :  { %v130_v39 = vmul.f32 0.5, %v126_v38  ;;  %190 = vtanh.f32 %v113_v37 }
 0x100   :  { %192 = vtanh.f32 %v130_v39 }
 0x103   :  { %v114_v40 = vpop.f32.mrf.mxu0  ;;  %v127_v41 = vpop.f32.mrf.mxu1 }
 0x104   :  { %v191_v42 = vpop.eup %190 }
 0x105   :  { %v135_v46 = vsub.f32 %v191_v42, %v134_v28 }
 0x106   :  { %v193_v43 = vpop.eup %192 }
 0x107   :  { %v132_v44 = vmul.f32 0.5, %v193_v43 }
 0x109   :  { %v133_v45 = vadd.f32 0.5, %v132_v44 }
 0x10b   :  { %v136_v47 = vmul.f32 %v135_v46, %v133_v45 }
 0x10d   :  { %v137_v48 = vadd.f32 %v136_v47, %v134_v28 }
 0x10f   :  { %138 = vst [vmem:[%s268_s4] sm:$0xff] %v137_v48 }
 0x110   :  { %143 = vsyncpa [#allocation3], 1 }

</bundles_post_ra>
